<compile_context>
chip_gen: v6e
topology: v6e:2x2x1
jax: 0.10.0
libtpu: 0.0.40
codegen_flags: <defaults>
</compile_context>

<pallas_src>
import functools

import jax
import jax.numpy as jnp
import numpy as np
from jax.experimental import pallas as pl
from jax.experimental.pallas import tpu as pltpu


def _round_up(x, m):
    return ((x + m - 1) // m) * m


# --------------------------------------------------------------------------- #
# Fused kernel: all Conv1d branches (tap-major) + masked AdaptiveMaxPool1d(1)
#               + bias/ReLU + (BN-folded) Linear head.
# --------------------------------------------------------------------------- #
def fused_tc_kernel(x_ref, wtap_ref, vlen_ref, bconv_ref, wfc_ref, bfc_ref,
                    o_ref, *, l_slab, k_max):
    # x_ref:     (Bt, Lx, Cin_p)    channels-last, zero-padded in L and Cin
    # wtap_ref:  (k_max, Cin_p, Dp) tap-major conv weights (branch-concatenated lanes)
    # vlen_ref:  (1, Dp) int32      per-lane valid output length (L - k_i + 1)
    # bconv_ref: (1, Dp)            conv biases, lane-concatenated (padding zeroed)
    # wfc_ref:   (Dp, Cpad)         BN-folded FC weight (padded rows/cols zeroed)
    # bfc_ref:   (1, Cpad)          BN-folded FC bias
    # o_ref:     (Bt, Cpad)         padded logits
    dp = wtap_ref.shape[2]

    # Tap-major conv: slab[b, t, :] = sum_j x[b, t + j, :] @ W_j   (one MXU pass
    # per tap, accumulating into a single lane-concatenated conv slab).
    slab = jnp.einsum("blc,cd->bld", x_ref[:, 0:l_slab, :], wtap_ref[0],
                      preferred_element_type=jnp.float32)
    for j in range(1, k_max):                                  # static unroll
        slab = slab + jnp.einsum("blc,cd->bld",
                                 x_ref[:, j:j + l_slab, :], wtap_ref[j],
                                 preferred_element_type=jnp.float32)

    # Mask invalid / padded time rows to a large negative before the max-pool.
    t_idx = jax.lax.broadcasted_iota(jnp.int32, (l_slab, dp), 0)
    valid = t_idx < vlen_ref[...]                              # (Ls, Dp)
    slab = jnp.where(valid[None], slab, -1e30)

    # max_t relu(z_t + b) == relu(max_t z_t + b): pool first, tiny VPU epilogue.
    feat = jnp.maximum(jnp.max(slab, axis=1) + bconv_ref[...], 0.0)   # (Bt, Dp)

    # Single BN-folded FC matmul.
    o_ref[...] = (jnp.dot(feat, wfc_ref[...], preferred_element_type=jnp.float32)
                  + bfc_ref[...]).astype(o_ref.dtype)


# --------------------------------------------------------------------------- #
# One-time parameter packing (load time): tap-major conv weights, BN folding.
# --------------------------------------------------------------------------- #
def prepare_tc_base(params, in_features, seq_len, eps=1e-5):
    ksizes = tuple(w.shape[0] for (w, _) in params["convs"])
    f_all = {w.shape[2] for (w, _) in params["convs"]}
    assert len(f_all) == 1, "all conv branches must share filter_num"
    F = params["convs"][0][0].shape[2]
    n = len(ksizes)
    k_max = max(ksizes)
    Cin = in_features
    Cin_p = _round_up(Cin, 8)
    D = n * F
    Dp = _round_up(D, 128)
    C = params["fc_w"].shape[1]
    Cpad = _round_up(C, 128)
    L = seq_len
    Ls = _round_up(L, 8)                       # slab (pooling window) length
    Lx = _round_up(Ls + k_max - 1, 8)          # padded x length (shift headroom)

    # Tap-major conv weights + biases + per-lane valid lengths.
    wtap = np.zeros((k_max, Cin_p, Dp), np.float32)
    bconv = np.zeros((1, Dp), np.float32)
    vlen = np.zeros((1, Dp), np.int32)
    for i, (w, b) in enumerate(params["convs"]):               # w: (k, Cin, F)
        k = w.shape[0]
        wtap[:k, :Cin, i * F:(i + 1) * F] = np.asarray(w, np.float32)
        bconv[0, i * F:(i + 1) * F] = np.asarray(b, np.float32).reshape(-1)
        vlen[0, i * F:(i + 1) * F] = L - k + 1

    # Fold inference BatchNorm into the Linear head.
    gamma = np.asarray(params["bn_gamma"], np.float32).reshape(-1)
    beta = np.asarray(params["bn_beta"], np.float32).reshape(-1)
    mean = np.asarray(params["bn_mean"], np.float32).reshape(-1)
    var = np.asarray(params["bn_var"], np.float32).reshape(-1)
    scale = gamma / np.sqrt(var + eps)
    fcw = np.asarray(params["fc_w"], np.float32)               # (D, C)
    fcb = np.asarray(params["fc_b"], np.float32).reshape(-1)   # (C,)
    w_fold = fcw * scale[:, None]
    b_fold = fcb + (beta - mean * scale) @ fcw

    wfc = np.zeros((Dp, Cpad), np.float32)
    wfc[:D, :C] = w_fold
    bfc = np.zeros((1, Cpad), np.float32)
    bfc[0, :C] = b_fold

    return dict(
        k_max=k_max, Cin=Cin, Cin_p=Cin_p, Dp=Dp, C=C, Cpad=Cpad,
        L=L, Ls=Ls, Lx=Lx,
        wtap=jnp.asarray(wtap), vlen=jnp.asarray(vlen),
        bconv=jnp.asarray(bconv), wfc=jnp.asarray(wfc), bfc=jnp.asarray(bfc))


def _forward_prepared(prep, x):
    B, L, Cin = x.shape
    assert L == prep["L"] and Cin == prep["Cin"]
    Lx, Ls = prep["Lx"], prep["Ls"]
    Cin_p, Dp, Cpad, k_max = prep["Cin_p"], prep["Dp"], prep["Cpad"], prep["k_max"]

    Bt = min(_round_up(B, 8), 256)             # batch tile (sublane-aligned)
    B_pad = _round_up(B, Bt)
    x_p = jnp.pad(x.astype(jnp.float32),
                  ((0, B_pad - B), (0, Lx - L), (0, Cin_p - Cin)))

    out = pl.pallas_call(
        functools.partial(fused_tc_kernel, l_slab=Ls, k_max=k_max),
        out_shape=jax.ShapeDtypeStruct((B_pad, Cpad), jnp.float32),
        grid=(B_pad // Bt,),
        in_specs=[
            pl.BlockSpec((Bt, Lx, Cin_p), lambda b: (b, 0, 0)),     # x: batch-tiled
            pl.BlockSpec((k_max, Cin_p, Dp), lambda b: (0, 0, 0)),  # weights resident
            pl.BlockSpec((1, Dp), lambda b: (0, 0)),
            pl.BlockSpec((1, Dp), lambda b: (0, 0)),
            pl.BlockSpec((Dp, Cpad), lambda b: (0, 0)),
            pl.BlockSpec((1, Cpad), lambda b: (0, 0)),
        ],
        out_specs=pl.BlockSpec((Bt, Cpad), lambda b: (b, 0)),
        compiler_params=pltpu.CompilerParams(
            dimension_semantics=("parallel",)),
    )(x_p, prep["wtap"], prep["vlen"], prep["bconv"], prep["wfc"], prep["bfc"])

    return out[:B, :prep["C"]]


# Convenience wrapper with the original (params, x) signature; packing is cached.
_PREP_CACHE = {}


def tc_base_forward(params, x, eps=1e-5):
    key = (id(params), x.shape[1], x.shape[2], float(eps))
    prep = _PREP_CACHE.get(key)
    if prep is None:
        prep = prepare_tc_base(params, x.shape[2], x.shape[1], eps)
        _PREP_CACHE[key] = prep
    return _forward_prepared(prep, x)


# --------------------------------------------------------------------------- #
# Parameter init + pure-JAX reference (unfused, unfolded) for validation
# --------------------------------------------------------------------------- #
def init_params(key, in_features, filter_num, filter_sizes, class_num):
    params = {"convs": []}
    for k in filter_sizes:
        key, kw, kb = jax.random.split(key, 3)
        bound = 1.0 / np.sqrt(in_features * k)
        w = jax.random.uniform(kw, (k, in_features, filter_num),
                               minval=-bound, maxval=bound, dtype=jnp.float32)
        b = jax.random.uniform(kb, (1, filter_num),
                               minval=-bound, maxval=bound, dtype=jnp.float32)
        params["convs"].append((w, b))
    D = filter_num * len(filter_sizes)
    key, kg, kbt, km, kv, kw, kb = jax.random.split(key, 7)
    params["bn_gamma"] = jax.random.uniform(kg, (1, D), minval=0.5, maxval=1.5)
    params["bn_beta"] = jax.random.uniform(kbt, (1, D), minval=-0.5, maxval=0.5)
    params["bn_mean"] = jax.random.uniform(km, (1, D), minval=-0.5, maxval=0.5)
    params["bn_var"] = jax.random.uniform(kv, (1, D), minval=0.5, maxval=1.5)
    bound = 1.0 / np.sqrt(D)
    params["fc_w"] = jax.random.uniform(kw, (D, class_num),
                                        minval=-bound, maxval=bound)
    params["fc_b"] = jax.random.uniform(kb, (1, class_num),
                                        minval=-bound, maxval=bound)
    return params


def tc_base_reference(params, x, eps=1e-5):
    outs = []
    for (w, b) in params["convs"]:
        k = w.shape[0]
        lout = x.shape[1] - k + 1
        acc = sum(jnp.einsum("blc,cf->blf", x[:, j:j + lout, :], w[j])
                  for j in range(k)) + b[None, :, :]
        outs.append(jnp.max(jnp.maximum(acc, 0.0), axis=1))
    feat = jnp.concatenate(outs, axis=1)
    xn = ((feat - params["bn_mean"]) * jax.lax.rsqrt(params["bn_var"] + eps)
          * params["bn_gamma"] + params["bn_beta"])
    return xn @ params["fc_w"] + params["fc_b"]


if __name__ == "__main__":
    B, L = 4, 12
    in_features, filter_num = 16, 32
    filter_sizes = (2, 3, 4)
    class_num = 5

    key = jax.random.PRNGKey(0)
    kx, kp = jax.random.split(key)
    x = jax.random.normal(kx, (B, L, in_features), dtype=jnp.float32)
    params = init_params(kp, in_features, filter_num, filter_sizes, class_num)

    # Load-time packing (done once, cached); per-call work is just pad + slice.
    out = tc_base_forward(params, x)
    out = jax.block_until_ready(out)
    # Second call hits the cache (no re-packing).
    out = jax.block_until_ready(tc_base_forward(params, x))

    ref = tc_base_reference(params, x)
    np.testing.assert_allclose(np.asarray(out), np.asarray(ref),
                               rtol=1e-4, atol=1e-4)
    assert out.shape == (B, class_num)
    print("KERNEL_OK")
</pallas_src>

<mosaic_0001>
module attributes {stable_mosaic.version = 11 : i64} {
  func.func @fused_tc_kernel(%arg0: i32, %arg1: memref<8x24x16xf32, #tpu.memory_space<vmem>>, %arg2: memref<4x16x128xf32, #tpu.memory_space<vmem>>, %arg3: memref<1x128xi32, #tpu.memory_space<vmem>>, %arg4: memref<1x128xf32, #tpu.memory_space<vmem>>, %arg5: memref<128x128xf32, #tpu.memory_space<vmem>>, %arg6: memref<1x128xf32, #tpu.memory_space<vmem>>, %arg7: memref<8x128xf32, #tpu.memory_space<vmem>>) attributes {dimension_semantics = [#tpu.dimension_semantics<parallel>], iteration_bounds = array<i64: 1>, scalar_prefetch = 0 : i64, scratch_operands = 0 : i64, tpu.core_type = #tpu.core_type<tc>, window_params = [{transform_indices = @transform_0, window_bounds = array<i64: 8, 24, 16>}, {pipeline_mode = #tpu.pipeline_mode<synchronous>, transform_indices = @transform_1, window_bounds = array<i64: 4, 16, 128>}, {pipeline_mode = #tpu.pipeline_mode<synchronous>, transform_indices = @transform_2, window_bounds = array<i64: 1, 128>}, {pipeline_mode = #tpu.pipeline_mode<synchronous>, transform_indices = @transform_3, window_bounds = array<i64: 1, 128>}, {pipeline_mode = #tpu.pipeline_mode<synchronous>, transform_indices = @transform_4, window_bounds = array<i64: 128, 128>}, {pipeline_mode = #tpu.pipeline_mode<synchronous>, transform_indices = @transform_5, window_bounds = array<i64: 1, 128>}, {transform_indices = @transform_6, window_bounds = array<i64: 8, 128>}]} {
    %c0 = arith.constant 0 : index
    %c0_0 = arith.constant 0 : index
    %c0_1 = arith.constant 0 : index
    %0 = vector.load %arg1[%c0, %c0_0, %c0_1] : memref<8x24x16xf32, #tpu.memory_space<vmem>>, vector<8x16x16xf32>
    %c0_2 = arith.constant 0 : index
    %c0_3 = arith.constant 0 : index
    %c0_4 = arith.constant 0 : index
    %1 = vector.load %arg2[%c0_2, %c0_3, %c0_4] : memref<4x16x128xf32, #tpu.memory_space<vmem>>, vector<1x16x128xf32>
    %2 = vector.shape_cast %1 : vector<1x16x128xf32> to vector<16x128xf32>
    "tpu.trace_start"() <{level = 10 : i32, message = "blc,cd->bld"}> : () -> ()
    %cst = arith.constant dense<0.000000e+00> : vector<8x16x128xf32>
    %3 = tpu.matmul %0, %2, %cst {dimension_numbers = #tpu.dot_dimension_numbers<[2], [0], [0, 1], [1], [0, 0, 0, 1, 1, 1], [], []>} : vector<8x16x16xf32>, vector<16x128xf32>, vector<8x16x128xf32> -> vector<8x16x128xf32>
    "tpu.trace_stop"() : () -> ()
    %c0_5 = arith.constant 0 : index
    %c1 = arith.constant 1 : index
    %c0_6 = arith.constant 0 : index
    %4 = vector.load %arg1[%c0_5, %c1, %c0_6] : memref<8x24x16xf32, #tpu.memory_space<vmem>>, vector<8x16x16xf32>
    %c1_7 = arith.constant 1 : index
    %c0_8 = arith.constant 0 : index
    %c0_9 = arith.constant 0 : index
    %5 = vector.load %arg2[%c1_7, %c0_8, %c0_9] : memref<4x16x128xf32, #tpu.memory_space<vmem>>, vector<1x16x128xf32>
    %6 = vector.shape_cast %5 : vector<1x16x128xf32> to vector<16x128xf32>
    "tpu.trace_start"() <{level = 10 : i32, message = "blc,cd->bld"}> : () -> ()
    %cst_10 = arith.constant dense<0.000000e+00> : vector<8x16x128xf32>
    %7 = tpu.matmul %4, %6, %cst_10 {dimension_numbers = #tpu.dot_dimension_numbers<[2], [0], [0, 1], [1], [0, 0, 0, 1, 1, 1], [], []>} : vector<8x16x16xf32>, vector<16x128xf32>, vector<8x16x128xf32> -> vector<8x16x128xf32>
    "tpu.trace_stop"() : () -> ()
    %8 = arith.addf %3, %7 : vector<8x16x128xf32>
    %c0_11 = arith.constant 0 : index
    %c2 = arith.constant 2 : index
    %c0_12 = arith.constant 0 : index
    %9 = vector.load %arg1[%c0_11, %c2, %c0_12] : memref<8x24x16xf32, #tpu.memory_space<vmem>>, vector<8x16x16xf32>
    %c2_13 = arith.constant 2 : index
    %c0_14 = arith.constant 0 : index
    %c0_15 = arith.constant 0 : index
    %10 = vector.load %arg2[%c2_13, %c0_14, %c0_15] : memref<4x16x128xf32, #tpu.memory_space<vmem>>, vector<1x16x128xf32>
    %11 = vector.shape_cast %10 : vector<1x16x128xf32> to vector<16x128xf32>
    "tpu.trace_start"() <{level = 10 : i32, message = "blc,cd->bld"}> : () -> ()
    %cst_16 = arith.constant dense<0.000000e+00> : vector<8x16x128xf32>
    %12 = tpu.matmul %9, %11, %cst_16 {dimension_numbers = #tpu.dot_dimension_numbers<[2], [0], [0, 1], [1], [0, 0, 0, 1, 1, 1], [], []>} : vector<8x16x16xf32>, vector<16x128xf32>, vector<8x16x128xf32> -> vector<8x16x128xf32>
    "tpu.trace_stop"() : () -> ()
    %13 = arith.addf %8, %12 : vector<8x16x128xf32>
    %c0_17 = arith.constant 0 : index
    %c3 = arith.constant 3 : index
    %c0_18 = arith.constant 0 : index
    %14 = vector.load %arg1[%c0_17, %c3, %c0_18] : memref<8x24x16xf32, #tpu.memory_space<vmem>>, vector<8x16x16xf32>
    %c3_19 = arith.constant 3 : index
    %c0_20 = arith.constant 0 : index
    %c0_21 = arith.constant 0 : index
    %15 = vector.load %arg2[%c3_19, %c0_20, %c0_21] : memref<4x16x128xf32, #tpu.memory_space<vmem>>, vector<1x16x128xf32>
    %16 = vector.shape_cast %15 : vector<1x16x128xf32> to vector<16x128xf32>
    "tpu.trace_start"() <{level = 10 : i32, message = "blc,cd->bld"}> : () -> ()
    %cst_22 = arith.constant dense<0.000000e+00> : vector<8x16x128xf32>
    %17 = tpu.matmul %14, %16, %cst_22 {dimension_numbers = #tpu.dot_dimension_numbers<[2], [0], [0, 1], [1], [0, 0, 0, 1, 1, 1], [], []>} : vector<8x16x16xf32>, vector<16x128xf32>, vector<8x16x128xf32> -> vector<8x16x128xf32>
    "tpu.trace_stop"() : () -> ()
    %18 = arith.addf %13, %17 : vector<8x16x128xf32>
    %19 = tpu.iota {dimensions = array<i32: 0>} : vector<16x128xi32>
    %c0_23 = arith.constant 0 : index
    %c0_24 = arith.constant 0 : index
    %20 = vector.load %arg3[%c0_23, %c0_24] : memref<1x128xi32, #tpu.memory_space<vmem>>, vector<1x128xi32>
    %21 = vector.broadcast %20 : vector<1x128xi32> to vector<16x128xi32>
    %22 = arith.cmpi slt, %19, %21 : vector<16x128xi32>
    %23 = vector.shape_cast %22 : vector<16x128xi1> to vector<1x16x128xi1>
    %cst_25 = arith.constant -1.000000e+30 : f32
    %24 = vector.shape_cast %23 : vector<1x16x128xi1> to vector<1x16x128xi1>
    %25 = vector.broadcast %24 : vector<1x16x128xi1> to vector<8x16x128xi1>
    %26 = vector.broadcast %cst_25 : f32 to vector<8x16x128xf32>
    %27 = arith.select %25, %18, %26 : vector<8x16x128xi1>, vector<8x16x128xf32>
    %cst_26 = arith.constant dense<0xFF800000> : vector<8x128xf32>
    %28 = vector.multi_reduction <maximumf>, %27, %cst_26 [1] : vector<8x16x128xf32> to vector<8x128xf32>
    %c0_27 = arith.constant 0 : index
    %c0_28 = arith.constant 0 : index
    %29 = vector.load %arg4[%c0_27, %c0_28] : memref<1x128xf32, #tpu.memory_space<vmem>>, vector<1x128xf32>
    %30 = vector.broadcast %29 : vector<1x128xf32> to vector<8x128xf32>
    %31 = arith.addf %28, %30 : vector<8x128xf32>
    %cst_29 = arith.constant 0.000000e+00 : f32
    %32 = vector.broadcast %cst_29 : f32 to vector<8x128xf32>
    %33 = arith.maximumf %31, %32 : vector<8x128xf32>
    %c0_30 = arith.constant 0 : index
    %c0_31 = arith.constant 0 : index
    %34 = vector.load %arg5[%c0_30, %c0_31] : memref<128x128xf32, #tpu.memory_space<vmem>>, vector<128x128xf32>
    %cst_32 = arith.constant dense<0.000000e+00> : vector<8x128xf32>
    %35 = tpu.matmul %33, %34, %cst_32 {dimension_numbers = #tpu.dot_dimension_numbers<[1], [0], [0], [1], [0, 0, 1, 1], [], []>} : vector<8x128xf32>, vector<128x128xf32>, vector<8x128xf32> -> vector<8x128xf32>
    %c0_33 = arith.constant 0 : index
    %c0_34 = arith.constant 0 : index
    %36 = vector.load %arg6[%c0_33, %c0_34] : memref<1x128xf32, #tpu.memory_space<vmem>>, vector<1x128xf32>
    %37 = vector.broadcast %36 : vector<1x128xf32> to vector<8x128xf32>
    %38 = arith.addf %35, %37 : vector<8x128xf32>
    %c0_35 = arith.constant 0 : index
    %c0_36 = arith.constant 0 : index
    %39 = vector.load %arg7[%c0_35, %c0_36] : memref<8x128xf32, #tpu.memory_space<vmem>>, vector<8x128xf32>
    tpu.vector_store %arg7[%c0_35, %c0_36], %38 {strides = array<i32>} : memref<8x128xf32, #tpu.memory_space<vmem>>, vector<8x128xf32>,
    return
  }
  func.func @transform_0(%arg0: i32) -> (i32, i32, i32) {
    %c0_i32 = arith.constant 0 : i32
    %c0_i32_0 = arith.constant 0 : i32
    %c0_i32_1 = arith.constant 0 : i32
    return %arg0, %c0_i32, %c0_i32_0 : i32, i32, i32
  }
  func.func @transform_1(%arg0: i32) -> (i32, i32, i32) {
    %c0_i32 = arith.constant 0 : i32
    %c0_i32_0 = arith.constant 0 : i32
    %c0_i32_1 = arith.constant 0 : i32
    %c0_i32_2 = arith.constant 0 : i32
    return %c0_i32, %c0_i32_0, %c0_i32_1 : i32, i32, i32
  }
  func.func @transform_2(%arg0: i32) -> (i32, i32) {
    %c0_i32 = arith.constant 0 : i32
    %c0_i32_0 = arith.constant 0 : i32
    %c0_i32_1 = arith.constant 0 : i32
    return %c0_i32, %c0_i32_0 : i32, i32
  }
  func.func @transform_3(%arg0: i32) -> (i32, i32) {
    %c0_i32 = arith.constant 0 : i32
    %c0_i32_0 = arith.constant 0 : i32
    %c0_i32_1 = arith.constant 0 : i32
    return %c0_i32, %c0_i32_0 : i32, i32
  }
  func.func @transform_4(%arg0: i32) -> (i32, i32) {
    %c0_i32 = arith.constant 0 : i32
    %c0_i32_0 = arith.constant 0 : i32
    %c0_i32_1 = arith.constant 0 : i32
    return %c0_i32, %c0_i32_0 : i32, i32
  }
  func.func @transform_5(%arg0: i32) -> (i32, i32) {
    %c0_i32 = arith.constant 0 : i32
    %c0_i32_0 = arith.constant 0 : i32
    %c0_i32_1 = arith.constant 0 : i32
    return %c0_i32, %c0_i32_0 : i32, i32
  }
  func.func @transform_6(%arg0: i32) -> (i32, i32) {
    %c0_i32 = arith.constant 0 : i32
    %c0_i32_0 = arith.constant 0 : i32
    return %arg0, %c0_i32 : i32, i32
  }
}

</mosaic_0001>

<bundles_post_ra>
// kernel: tpu_custom_call.1
= control target key start
LH: loop header
LB: loop body
LE: loop exit
PB: predicated region body
PF: predicated region fallthrough
CT: control target
= control target key end

     0   :  { %vm61_vm0 = vcmask 130048   ;;  %s1945_s0 = inlined_call_operand.vmem [shape: f32[8,24,16], index: 0, kind: input, shape index: {}]   ;;  %s1946_s1 = inlined_call_operand.vmem [shape: f32[4,16,128], index: 1, kind: input, shape index: {}]   ;;  %s1947_s2 = inlined_call_operand.vmem [shape: s32[1,128], index: 2, kind: input, shape index: {}]   ;;  %s1948_s3 = inlined_call_operand.vmem [shape: f32[1,128], index: 3, kind: input, shape index: {}]   ;;  %s1949_s4 = inlined_call_operand.vmem [shape: f32[128,128], index: 4, kind: input, shape index: {}]   ;;  %s1950_s5 = inlined_call_operand.vmem [shape: f32[1,128], index: 5, kind: input, shape index: {}]   ;;  %s1951_s6 = inlined_call_operand.hbm [shape: f32[8,128], index: 6, kind: output, shape index: {}]  }
   0x1   :  { %v1152_v0 = vld [vmem:[%s1946_s1 + $0x18] sm:$0xff]  ;;  %v41_v1 = vld [vmem:[%s1946_s1 + $0x8] sm:$0xff]  ;;  %v1151_v2 = vld [vmem:[%s1946_s1 + $0x10] sm:$0xff] }
   0x2   :  { %1313 = vmatprep.subr.mxu0 %v1152_v0  ;;  %1341 = vmatprep.subr.mxu1 %v41_v1  ;;  %v40_v3 = vld [vmem:[%s1946_s1] sm:$0xff]  ;;  %v43_v6 = vld [vmem:[%s1945_s0 + $0x9] sm:$0xff]  ;;  %v1204_v9 = vld [vmem:[%s1946_s1 + $0x38] sm:$0xff] }
   0x3   :  { %v42_v4 = vld [vmem:[%s1945_s0 + $0x1] sm:$0xff]  ;;  %1314 = vmatpush3.msra.mxu0 %v1152_v0  ;;  %1342 = vmatpush3.msra.mxu1 %v41_v1  ;;  %v44_v10 = vld [vmem:[%s1945_s0 + $0x19] sm:$0xff]  ;;  %v46_v14 = vld [vmem:[%s1945_s0 + $0x31] sm:$0xff] }
   0x4   :  { %v24_v5 = vld [vmem:[%s1945_s0] sm:$0xff]  ;;  %1315 = vmatprep.subr.mxu0 %v1151_v2  ;;  %1343 = vmatprep.subr.mxu1 %v40_v3  ;;  %v25_v7 = vld [vmem:[%s1945_s0 + $0x8] sm:$0xff]  ;;  %v26_v11 = vld [vmem:[%s1945_s0 + $0x18] sm:$0xff] }
   0x5   :  { %1316 = vmatpush3.msra.mxu0 %v1151_v2  ;;  %1317 = vmatprep.mubr.msk.f32.mxu0 %vm61_vm0, %v42_v4  ;;  %v1186_v8 = vld [vmem:[%s1946_s1 + $0x28] sm:$0xff]  ;;  %v27_v13 = vld [vmem:[%s1945_s0 + $0x20] sm:$0xff]  ;;  %v28_v15 = vld [vmem:[%s1945_s0 + $0x30] sm:$0xff] }
   0x6   :  { %1344 = vmatpush3.msra.mxu1 %v40_v3  ;;  %1345 = vmatprep.mubr.msk.f32.mxu1 %vm61_vm0, %v24_v5  ;;  %v45_v12 = vld [vmem:[%s1945_s0 + $0x21] sm:$0xff]  ;;  %v1203_v17 = vld [vmem:[%s1946_s1 + $0x30] sm:$0xff]  ;;  %v47_v18 = vld [vmem:[%s1945_s0 + $0x39] sm:$0xff] }
   0x7   :  { %1318 = vmatmul.mubr.msk.f32.vlgmr.msra.gmra.mxu0 %vm61_vm0, %v43_v6  ;;  %1346 = vmatmul.mubr.msk.f32.vlgmr.msra.gmra.mxu1 %vm61_vm0, %v25_v7  ;;  %v1185_v16 = vld [vmem:[%s1946_s1 + $0x20] sm:$0xff]  ;;  %v29_v19 = vld [vmem:[%s1945_s0 + $0x38] sm:$0xff]  ;;  %v48_v20 = vld [vmem:[%s1945_s0 + $0x49] sm:$0xff] }
   0x8   :  { %1369 = vmatprep.subr.mxu0 %v1186_v8  ;;  %1397 = vmatprep.subr.mxu1 %v1204_v9  ;;  %v30_v21 = vld [vmem:[%s1945_s0 + $0x48] sm:$0xff]  ;;  %v49_v22 = vld [vmem:[%s1945_s0 + $0x51] sm:$0xff]  ;;  %v32_v25 = vld [vmem:[%s1945_s0 + $0x60] sm:$0xff] }
   0x9   :  { %1370 = vmatpush3.msra.mxu0 %v1186_v8  ;;  %1320 = vmatprep.mubr.msk.f32.mxu0 %vm61_vm0, %v44_v10  ;;  %v31_v23 = vld [vmem:[%s1945_s0 + $0x50] sm:$0xff]  ;;  %v50_v24 = vld [vmem:[%s1945_s0 + $0x61] sm:$0xff]  ;;  %v52_v28 = vld [vmem:[%s1945_s0 + $0x79] sm:$0xff] }
   0xa   :  { %1348 = vmatprep.mubr.msk.f32.mxu1 %vm61_vm0, %v26_v11  ;;  %1398 = vmatpush3.msra.mxu1 %v1204_v9  ;;  %v51_v26 = vld [vmem:[%s1945_s0 + $0x69] sm:$0xff]  ;;  %v34_v29 = vld [vmem:[%s1945_s0 + $0x78] sm:$0xff]  ;;  %v53_v30 = vld [vmem:[%s1945_s0 + $0x81] sm:$0xff] }
   0xb   :  { %1321 = vmatmul.mubr.msk.f32.gmra.mxu0 %vm61_vm0, %v45_v12  ;;  %1349 = vmatmul.mubr.msk.f32.gmra.mxu1 %vm61_vm0, %v27_v13  ;;  %v33_v27 = vld [vmem:[%s1945_s0 + $0x68] sm:$0xff]  ;;  %v35_v31 = vld [vmem:[%s1945_s0 + $0x80] sm:$0xff]  ;;  %v54_v32 = vld [vmem:[%s1945_s0 + $0x91] sm:$0xff] }
   0xc   :  { %1323 = vmatprep.mubr.msk.f32.mxu0 %vm61_vm0, %v46_v14  ;;  %1351 = vmatprep.mubr.msk.f32.mxu1 %vm61_vm0, %v28_v15  ;;  %v36_v33 = vld [vmem:[%s1945_s0 + $0x90] sm:$0xff] }
   0xd   :  { %1371 = vmatprep.subr.mxu0 %v1185_v16  ;;  %1399 = vmatprep.subr.mxu1 %v1203_v17 }
   0xe   :  { %1372 = vmatpush3.msra.mxu0 %v1185_v16  ;;  %1400 = vmatpush3.msra.mxu1 %v1203_v17 }
   0xf   :  { %1324 = vmatmul.mubr.msk.f32.gmra.mxu0 %vm61_vm0, %v47_v18  ;;  %1352 = vmatmul.mubr.msk.f32.gmra.mxu1 %vm61_vm0, %v29_v19 }
  0x10   :  { %1326 = vmatprep.mubr.msk.f32.mxu0 %vm61_vm0, %v48_v20  ;;  %1354 = vmatprep.mubr.msk.f32.mxu1 %vm61_vm0, %v30_v21 }
  0x13   :  { %1327 = vmatmul.mubr.msk.f32.gmra.mxu0 %vm61_vm0, %v49_v22  ;;  %1355 = vmatmul.mubr.msk.f32.gmra.mxu1 %vm61_vm0, %v31_v23 }
  0x14   :  { %1329 = vmatprep.mubr.msk.f32.mxu0 %vm61_vm0, %v50_v24  ;;  %1357 = vmatprep.mubr.msk.f32.mxu1 %vm61_vm0, %v32_v25 }
  0x17   :  { %1330 = vmatmul.mubr.msk.f32.gmra.mxu0 %vm61_vm0, %v51_v26  ;;  %1358 = vmatmul.mubr.msk.f32.gmra.mxu1 %vm61_vm0, %v33_v27 }
  0x18   :  { %1332 = vmatprep.mubr.msk.f32.mxu0 %vm61_vm0, %v52_v28  ;;  %1360 = vmatprep.mubr.msk.f32.mxu1 %vm61_vm0, %v34_v29 }
  0x19   :  { %11 = vsyncpa [#allocation3], 0  ;;  %v55_v34 = vld [vmem:[%s1945_s0 + $0x99] sm:$0xff]  ;;  %v56_v36 = vld [vmem:[%s1945_s0 + $0xa9] sm:$0xff]  ;;  %v1485_v8 = vmov 0.0   ;;  %vm1486_vm1 = vmmov 0  }
  0x1a   :  { %v37_v35 = vld [vmem:[%s1945_s0 + $0x98] sm:$0xff]  ;;  %v38_v37 = vld [vmem:[%s1945_s0 + $0xa8] sm:$0xff]  ;;  %v39_v39 = vld [vmem:[%s1945_s0 + $0xb0] sm:$0xff]  ;;  %1425 = vmatprep.subr.mxu0 %v1485_v8  ;;  %vm1045_vm4 = vcmask 1041409   ;;  %vm1048_vm5 = vcmask 1042434   ;;  %vm1051_vm6 = vcmask 1043459  }
  0x1b   :  { %1333 = vmatmul.mubr.msk.f32.gmra.mxu0 %vm61_vm0, %v53_v30  ;;  %1361 = vmatmul.mubr.msk.f32.gmra.mxu1 %vm61_vm0, %v35_v31  ;;  %v57_v38 = vld [vmem:[%s1945_s0 + $0xb1] sm:$0xff]  ;;  %v448_v40 = vld [vmem:[%s1945_s0 + $0x2] sm:$0xff]  ;;  %v450_v44 = vld [vmem:[%s1945_s0 + $0x1a] sm:$0xff]  ;;  %vm1054_vm7 = vcmask 1044484   ;;  %vm1057_vm8 = vcmask 1045509   ;;  %vm1060_vm9 = vcmask 1046534  }
  0x1c   :  { %1335 = vmatprep.mubr.msk.f32.mxu0 %vm61_vm0, %v54_v32  ;;  %1363 = vmatprep.mubr.msk.f32.mxu1 %vm61_vm0, %v36_v33  ;;  %v676_v41 = vld [vmem:[%s1945_s0 + $0x3] sm:$0xff]  ;;  %v677_v43 = vld [vmem:[%s1945_s0 + $0xb] sm:$0xff]  ;;  %v678_v45 = vld [vmem:[%s1945_s0 + $0x1b] sm:$0xff]  ;;  %vm1063_vm10 = vcmask 1047559   ;;  %s1487_s24 = smov [#allocation2]  }
  0x1d   :  { %v449_v42 = vld [vmem:[%s1945_s0 + $0xa] sm:$0xff]  ;;  %v451_v46 = vld [vmem:[%s1945_s0 + $0x22] sm:$0xff]  ;;  %v452_v48 = vld [vmem:[%s1945_s0 + $0x32] sm:$0xff]  ;;  %s1143_s25 = sshll.u32 %s1487_s24, 4  ;;  %s1144_s25 = int_to_ptr.vmem [resolvable:$true] %s1143_s25 }
  0x1e   :  { %v679_v47 = vld [vmem:[%s1945_s0 + $0x23] sm:$0xff]  ;;  %v680_v49 = vld [vmem:[%s1945_s0 + $0x33] sm:$0xff]  ;;  %v681_v51 = vld [vmem:[%s1945_s0 + $0x3b] sm:$0xff]  ;;  %s1463_s26 = scalar_lea.vmem %s1144_s25, 128  ;;  %p1468_p1 = scmp.lt.s32.totalorder %s1144_s25, %s1144_s25 }
  0x1f   :  { %1336 = vmatmul.mubr.msk.f32.gmra.mxu0 %vm61_vm0, %v55_v34  ;;  %1364 = vmatmul.mubr.msk.f32.gmra.mxu1 %vm61_vm0, %v37_v35  ;;  %v453_v50 = vld [vmem:[%s1945_s0 + $0x3a] sm:$0xff]  ;;  %v454_v52 = vld [vmem:[%s1945_s0 + $0x4a] sm:$0xff]  ;;  %v455_v54 = vld [vmem:[%s1945_s0 + $0x52] sm:$0xff]  ;;  %p1464_p0 = scmp.ne.s32.totalorder %s1144_s25, %s1463_s26  ;;  %p1469_p2 = scmp.lt.s32.totalorder %s1463_s26, %s1463_s26 }
  0x20   :  { %1338 = vmatprep.mubr.msk.f32.mxu0 %vm61_vm0, %v56_v36  ;;  %1366 = vmatprep.mubr.msk.f32.mxu1 %vm61_vm0, %v38_v37  ;;  %v682_v53 = vld [vmem:[%s1945_s0 + $0x4b] sm:$0xff]  ;;  %v683_v55 = vld [vmem:[%s1945_s0 + $0x53] sm:$0xff]  ;;  %v456_v56 = vld [vmem:[%s1945_s0 + $0x62] sm:$0xff] }
  0x21   :  { %v684_v57 = vld [vmem:[%s1945_s0 + $0x63] sm:$0xff]  ;;  %v685_v59 = vld [vmem:[%s1945_s0 + $0x6b] sm:$0xff]  ;;  %v458_v60 = vld [vmem:[%s1945_s0 + $0x7a] sm:$0xff]  ;;  %p1470_p3 = por %p1469_p2, %p1468_p1 }
  0x22   :  { %v457_v58 = vld [vmem:[%s1945_s0 + $0x6a] sm:$0xff]  ;;  %v686_v61 = vld [vmem:[%s1945_s0 + $0x7b] sm:$0xff]  ;;  %v460_v0 = vld [vmem:[%s1945_s0 + $0x92] sm:$0xff] }
  0x23   :  { %1339 = vmatmul.mubr.msk.f32.gmra.mxu0 %vm61_vm0, %v57_v38  ;;  %1367 = vmatmul.mubr.msk.f32.gmra.mxu1 %vm61_vm0, %v39_v39  ;;  %v459_v62 = vld [vmem:[%s1945_s0 + $0x82] sm:$0xff]  ;;  %v688_v1 = vld [vmem:[%s1945_s0 + $0x93] sm:$0xff]  ;;  %v462_v4 = vld [vmem:[%s1945_s0 + $0xaa] sm:$0xff]  ;;  %p1471_p4 = pnand %p1470_p3, %p1464_p0 }
  0x24   :  { %1373 = vmatprep.mubr.msk.f32.mxu0 %vm61_vm0, %v448_v40  ;;  %1401 = vmatprep.mubr.msk.f32.mxu1 %vm61_vm0, %v676_v41  ;;  %v687_v63 = vld [vmem:[%s1945_s0 + $0x83] sm:$0xff]  ;;  %v461_v2 = vld [vmem:[%s1945_s0 + $0x9a] sm:$0xff]  ;;  %v690_v5 = vld [vmem:[%s1945_s0 + $0xab] sm:$0xff] }
  0x25   :  { %v689_v3 = vld [vmem:[%s1945_s0 + $0x9b] sm:$0xff]  ;;  %v463_v6 = vld [vmem:[%s1945_s0 + $0xb2] sm:$0xff]  ;;  %v1026_v11 = vld [vmem:[%s1949_s4 + $0x68] sm:$0xff] }
  0x26   :  { %v691_v7 = vld [vmem:[%s1945_s0 + $0xb3] sm:$0xff]  ;;  %v1025_v12 = vld [vmem:[%s1949_s4 + $0x60] sm:$0xff]  ;;  %v1022_v15 = vld [vmem:[%s1949_s4 + $0x48] sm:$0xff] }
  0x27   :  { %1374 = vmatmul.mubr.msk.f32.vlgmr.msra.gmra.mxu0 %vm61_vm0, %v449_v42  ;;  %1402 = vmatmul.mubr.msk.f32.vlgmr.msra.gmra.mxu1 %vm61_vm0, %v677_v43  ;;  %v1028_v9 = vld [vmem:[%s1949_s4 + $0x78] sm:$0xff]  ;;  %v1027_v10 = vld [vmem:[%s1949_s4 + $0x70] sm:$0xff]  ;;  %v1021_v16 = vld [vmem:[%s1949_s4 + $0x40] sm:$0xff] }
  0x28   :  { %1376 = vmatprep.mubr.msk.f32.mxu0 %vm61_vm0, %v450_v44  ;;  %1404 = vmatprep.mubr.msk.f32.mxu1 %vm61_vm0, %v678_v45  ;;  %v1024_v13 = vld [vmem:[%s1949_s4 + $0x58] sm:$0xff]  ;;  %v1023_v14 = vld [vmem:[%s1949_s4 + $0x50] sm:$0xff]  ;;  %v1018_v19 = vld [vmem:[%s1949_s4 + $0x28] sm:$0xff] }
  0x29   :  { %1426 = vmatpush3.msra.mxu0 %v1028_v9  ;;  %v1020_v17 = vld [vmem:[%s1949_s4 + $0x38] sm:$0xff]  ;;  %v1019_v18 = vld [vmem:[%s1949_s4 + $0x30] sm:$0xff]  ;;  %v1017_v20 = vld [vmem:[%s1949_s4 + $0x20] sm:$0xff] }
  0x2a   :  { %1427 = vmatprep.subr.mxu0 %v1485_v8  ;;  %v1016_v21 = vld [vmem:[%s1949_s4 + $0x18] sm:$0xff]  ;;  %v1015_v22 = vld [vmem:[%s1949_s4 + $0x10] sm:$0xff]  ;;  %v1014_v23 = vld [vmem:[%s1949_s4 + $0x8] sm:$0xff] }
  0x2b   :  { %1377 = vmatmul.mubr.msk.f32.gmra.mxu0 %vm61_vm0, %v451_v46  ;;  %1405 = vmatmul.mubr.msk.f32.gmra.mxu1 %vm61_vm0, %v679_v47  ;;  %v1013_v24 = vld [vmem:[%s1949_s4] sm:$0xff] }
  0x2c   :  { %1379 = vmatprep.mubr.msk.f32.mxu0 %vm61_vm0, %v452_v48  ;;  %1407 = vmatprep.mubr.msk.f32.mxu1 %vm61_vm0, %v680_v49 }
  0x2d   :  { %1428 = vmatpush3.msra.mxu0 %v1027_v10 }
  0x2e   :  { %1429 = vmatprep.subr.mxu0 %v1485_v8 }
  0x2f   :  { %1380 = vmatmul.mubr.msk.f32.gmra.mxu0 %vm61_vm0, %v453_v50  ;;  %1408 = vmatmul.mubr.msk.f32.gmra.mxu1 %vm61_vm0, %v681_v51 }
  0x30   :  { %1382 = vmatprep.mubr.msk.f32.mxu0 %vm61_vm0, %v454_v52  ;;  %1410 = vmatprep.mubr.msk.f32.mxu1 %vm61_vm0, %v682_v53 }
  0x31   :  { %1430 = vmatpush3.msra.mxu0 %v1026_v11 }
  0x32   :  { %1431 = vmatprep.subr.mxu0 %v1485_v8 }
  0x33   :  { %1383 = vmatmul.mubr.msk.f32.gmra.mxu0 %vm61_vm0, %v455_v54  ;;  %1411 = vmatmul.mubr.msk.f32.gmra.mxu1 %vm61_vm0, %v683_v55 }
  0x34   :  { %1385 = vmatprep.mubr.msk.f32.mxu0 %vm61_vm0, %v456_v56  ;;  %1413 = vmatprep.mubr.msk.f32.mxu1 %vm61_vm0, %v684_v57  ;;  %v904_v57 = vlaneseq }
  0x35   :  { %1432 = vmatpush3.msra.mxu0 %v1025_v12  ;;  %v1221_v12 = vld [vmem:[%s1947_s2] ss:$0 sm:$0xff] }
  0x36   :  { %1433 = vmatprep.subr.mxu0 %v1485_v8 }
  0x37   :  { %1386 = vmatmul.mubr.msk.f32.gmra.mxu0 %vm61_vm0, %v457_v58  ;;  %1414 = vmatmul.mubr.msk.f32.gmra.mxu1 %vm61_vm0, %v685_v59 }
  0x38   :  { %1388 = vmatprep.mubr.msk.f32.mxu0 %vm61_vm0, %v458_v60  ;;  %1416 = vmatprep.mubr.msk.f32.mxu1 %vm61_vm0, %v686_v61  ;;  %v905_v60 = vshrl.u32 %v904_v57, 7 }
  0x39   :  { %1434 = vmatpush3.msra.mxu0 %v1024_v13 }
  0x3a   :  { %1435 = vmatprep.subr.mxu0 %v1485_v8  ;;  %vm1886_vm3 = vcmp.lt.s32.totalorder %v905_v60, %v1221_v12 }
  0x3b   :  { %1389 = vmatmul.mubr.msk.f32.gmra.mxu0 %vm61_vm0, %v459_v62  ;;  %1417 = vmatmul.mubr.msk.f32.gmra.mxu1 %vm61_vm0, %v687_v63 }
  0x3c   :  { %1391 = vmatprep.mubr.msk.f32.mxu0 %vm61_vm0, %v460_v0  ;;  %1419 = vmatprep.mubr.msk.f32.mxu1 %vm61_vm0, %v688_v1 }
  0x3d   :  { %1436 = vmatpush3.msra.mxu0 %v1023_v14 }
  0x3e   :  { %1437 = vmatprep.subr.mxu0 %v1485_v8 }
  0x3f   :  { %1392 = vmatmul.mubr.msk.f32.gmra.mxu0 %vm61_vm0, %v461_v2  ;;  %1420 = vmatmul.mubr.msk.f32.gmra.mxu1 %vm61_vm0, %v689_v3 }
  0x40   :  { %1394 = vmatprep.mubr.msk.f32.mxu0 %vm61_vm0, %v462_v4  ;;  %1422 = vmatprep.mubr.msk.f32.mxu1 %vm61_vm0, %v690_v5 }
  0x41   :  { %1438 = vmatpush3.msra.mxu0 %v1022_v15 }
  0x42   :  { %1439 = vmatprep.subr.mxu0 %v1485_v8 }
  0x43   :  { %1395 = vmatmul.mubr.msk.f32.gmra.mxu0 %vm61_vm0, %v463_v6  ;;  %1423 = vmatmul.mubr.msk.f32.gmra.mxu1 %vm61_vm0, %v691_v7 }
  0x44   :  { %1440 = vmatpush3.msra.mxu0 %v1021_v16  ;;  %1457 = vmatprep.mubr.msk.f32.mxu0 %vm1486_vm1, %v1485_v8 }
  0x45   :  { %1441 = vmatprep.subr.mxu0 %v1485_v8 }
  0x46   :  { %1442 = vmatpush3.msra.mxu0 %v1020_v17 }
  0x47   :  { %1443 = vmatprep.subr.mxu0 %v1485_v8 }
  0x48   :  { %1444 = vmatpush3.msra.mxu0 %v1019_v18 }
  0x49   :  { %1445 = vmatprep.subr.mxu0 %v1485_v8 }
  0x4a   :  { %1446 = vmatpush3.msra.mxu0 %v1018_v19 }
  0x4b   :  { %1447 = vmatprep.subr.mxu0 %v1485_v8 }
  0x4c   :  { %1448 = vmatpush3.msra.mxu0 %v1017_v20 }
  0x4d   :  { %1449 = vmatprep.subr.mxu0 %v1485_v8 }
  0x4e   :  { %1450 = vmatpush3.msra.mxu0 %v1016_v21 }
  0x4f   :  { %1451 = vmatprep.subr.mxu0 %v1485_v8 }
  0x50   :  { %1452 = vmatpush3.msra.mxu0 %v1015_v22 }
  0x51   :  { %1453 = vmatprep.subr.mxu0 %v1485_v8 }
  0x52   :  { %1454 = vmatpush3.msra.mxu0 %v1014_v23 }
  0x53   :  { %1455 = vmatprep.subr.mxu0 %v1485_v8  ;;  %v906_v8 = vadd.s32 8, %v905_v60 }
  0x54   :  { %1456 = vmatpush3.msra.mxu0 %v1013_v24 }
  0x55   :  { %vm1882_vm2 = vcmp.lt.s32.totalorder %v906_v8, %v1221_v12 }
  0xc7   :  { %v1319_v25 = vpop.f32.mrf.mxu0  ;;  %v1347_v26 = vpop.f32.mrf.mxu1 }
  0xc8   :  { %v375_v1 = vadd.f32 %v1347_v26, %v1319_v25 }
  0xc9   :  { %v176_v27 = vpop.f32.mrf.mxu0  ;;  %v369_v28 = vpop.f32.mrf.mxu1 }
  0xca   :  { %v370_v63 = vadd.f32 %v369_v28, %v176_v27 }
  0xcb   :  { %v1322_v29 = vpop.f32.mrf.mxu0  ;;  %v1350_v30 = vpop.f32.mrf.mxu1 }
  0xcc   :  { %v385_v0 = vadd.f32 %v1350_v30, %v1322_v29 }
  0xcd   :  { %v186_v31 = vpop.f32.mrf.mxu0  ;;  %v379_v32 = vpop.f32.mrf.mxu1 }
  0xce   :  { %v380_v4 = vadd.f32 %v379_v32, %v186_v31 }
  0xcf   :  { %v1325_v33 = vpop.f32.mrf.mxu0  ;;  %v1353_v34 = vpop.f32.mrf.mxu1 }
  0xd0   :  { %v395_v11 = vadd.f32 %v1353_v34, %v1325_v33 }
  0xd1   :  { %v196_v35 = vpop.f32.mrf.mxu0  ;;  %v389_v36 = vpop.f32.mrf.mxu1 }
  0xd2   :  { %v390_v17 = vadd.f32 %v389_v36, %v196_v35 }
  0xd3   :  { %v1328_v37 = vpop.f32.mrf.mxu0  ;;  %v1356_v38 = vpop.f32.mrf.mxu1 }
  0xd4   :  { %v405_v21 = vadd.f32 %v1356_v38, %v1328_v37 }
  0xd5   :  { %v206_v39 = vpop.f32.mrf.mxu0  ;;  %v399_v40 = vpop.f32.mrf.mxu1 }
  0xd6   :  { %v400_v34 = vadd.f32 %v399_v40, %v206_v39 }
  0xd7   :  { %v1331_v41 = vpop.f32.mrf.mxu0  ;;  %v1359_v42 = vpop.f32.mrf.mxu1 }
  0xd8   :  { %v415_v38 = vadd.f32 %v1359_v42, %v1331_v41 }
  0xd9   :  { %v1851_v43 = vpop.f32.mrf.mxu0  ;;  %v1853_v44 = vpop.f32.mrf.mxu1 }
  0xda   :  { %v410_v41 = vadd.f32 %v1853_v44, %v1851_v43 }
  0xdb   :  { %v1855_v45 = vpop.f32.mrf.mxu0  ;;  %v1857_v46 = vpop.f32.mrf.mxu1 }
  0xdc   :  { %v425_v8 = vadd.f32 %v1857_v46, %v1855_v45 }
  0xdd   :  { %v1859_v47 = vpop.f32.mrf.mxu0  ;;  %v1861_v48 = vpop.f32.mrf.mxu1 }
  0xdf   :  { %v1863_v49 = vpop.f32.mrf.mxu0  ;;  %v1865_v50 = vpop.f32.mrf.mxu1 }
  0xe1   :  { %v1867_v51 = vpop.f32.mrf.mxu0  ;;  %v1869_v52 = vpop.f32.mrf.mxu1 }
  0xe3   :  { %v1871_v53 = vpop.f32.mrf.mxu0  ;;  %v1873_v54 = vpop.f32.mrf.mxu1 }
  0xe5   :  { %v1875_v55 = vpop.f32.mrf.mxu0  ;;  %v1877_v56 = vpop.f32.mrf.mxu1 }
  0xe7   :  { %v1375_v58 = vpop.f32.mrf.mxu0  ;;  %v1403_v59 = vpop.f32.mrf.mxu1 }
  0xe8   :  { %v661_v7 = vadd.f32 %v1375_v58, %v375_v1 }
  0xe9   :  { %v581_v61 = vpop.f32.mrf.mxu0  ;;  %v809_v62 = vpop.f32.mrf.mxu1 }
  0xea   :  { %v660_v5 = vadd.f32 %v581_v61, %v370_v63  ;;  %v889_v22 = vadd.f32 %v1403_v59, %v661_v7 }
  0xeb   :  { %v1378_v2 = vpop.f32.mrf.mxu0  ;;  %v1406_v3 = vpop.f32.mrf.mxu1 }
  0xec   :  { %v663_v6 = vadd.f32 %v1378_v2, %v385_v0  ;;  %v888_v18 = vadd.f32 %v809_v62, %v660_v5  ;;  %v919_v57 = vsel %vm1882_vm2, %v889_v22, -1e+30  ;;  %v435_v22 = vadd.f32 %v1865_v50, %v1863_v49 }
  0xed   :  { %v591_v9 = vpop.f32.mrf.mxu0  ;;  %v819_v10 = vpop.f32.mrf.mxu1  ;;  %v445_v49 = vadd.f32 %v1873_v54, %v1871_v53  ;;  %v440_v53 = vadd.f32 %v1877_v56, %v1875_v55 }
  0xee   :  { %v891_v13 = vadd.f32 %v1406_v3, %v663_v6  ;;  %v662_v14 = vadd.f32 %v591_v9, %v380_v4  ;;  %v918_v35 = vsel %vm1886_vm3, %v888_v18, -1e+30 }
  0xef   :  { %v1381_v15 = vpop.f32.mrf.mxu0  ;;  %v1409_v16 = vpop.f32.mrf.mxu1  ;;  %v934_v40 = vmax.f32 %v918_v35, %v919_v57 }
  0xf0   :  { %v890_v19 = vadd.f32 %v819_v10, %v662_v14  ;;  %v665_v20 = vadd.f32 %v1381_v15, %v395_v11  ;;  %v921_v27 = vsel %vm1882_vm2, %v891_v13, -1e+30 }
  0xf1   :  { %v601_v25 = vpop.f32.mrf.mxu0  ;;  %v829_v26 = vpop.f32.mrf.mxu1  ;;  %v935_v12 = vrot.slane %v934_v40, 4 }
  0xf2   :  { %v920_v28 = vsel %vm1886_vm3, %v890_v19, -1e+30  ;;  %v893_v29 = vadd.f32 %v1409_v16, %v665_v20  ;;  %v664_v30 = vadd.f32 %v601_v25, %v390_v17  ;;  %v420_v16 = vadd.f32 %v1861_v48, %v1859_v47 }
  0xf3   :  { %v941_v31 = vmax.f32 %v920_v28, %v921_v27  ;;  %v1384_v32 = vpop.f32.mrf.mxu0  ;;  %v1412_v33 = vpop.f32.mrf.mxu1  ;;  %v936_v28 = vmax.f32 %v934_v40, %v935_v12 }
  0xf4   :  { %v892_v36 = vadd.f32 %v829_v26, %v664_v30  ;;  %v667_v37 = vadd.f32 %v1384_v32, %v405_v21  ;;  %v923_v61 = vsel %vm1882_vm2, %v893_v29, -1e+30 }
  0xf5   :  { %v942_v58 = vrot.slane %v941_v31, 4  ;;  %v611_v59 = vpop.f32.mrf.mxu0  ;;  %v839_v60 = vpop.f32.mrf.mxu1 }
  0xf6   :  { %v922_v62 = vsel %vm1886_vm3, %v892_v36, -1e+30  ;;  %v895_v63 = vadd.f32 %v1412_v33, %v667_v37  ;;  %v666_v39 = vadd.f32 %v611_v59, %v400_v34 }
  0xf7   :  { %v948_v0 = vmax.f32 %v922_v62, %v923_v61  ;;  %v1387_v1 = vpop.f32.mrf.mxu0  ;;  %v1415_v2 = vpop.f32.mrf.mxu1  ;;  %v943_v4 = vmax.f32 %v941_v31, %v942_v58  ;;  %v430_v31 = vadd.f32 %v1869_v52, %v1867_v51  ;;  %v937_v51 = vrot.slane %v936_v28, 2 }
  0xf8   :  { %v894_v42 = vadd.f32 %v839_v60, %v666_v39  ;;  %v669_v3 = vadd.f32 %v1387_v1, %v415_v38  ;;  %v925_v9 = vsel %vm1882_vm2, %v895_v63, -1e+30 }
  0xf9   :  { %v949_v5 = vrot.slane %v948_v0, 4  ;;  %v621_v6 = vpop.f32.mrf.mxu0  ;;  %v849_v7 = vpop.f32.mrf.mxu1  ;;  %v944_v19 = vrot.slane %v943_v4, 2 }
  0xfa   :  { %v924_v10 = vsel %vm1886_vm3, %v894_v42, -1e+30  ;;  %v668_v11 = vadd.f32 %v621_v6, %v410_v41  ;;  %v897_v43 = vadd.f32 %v1415_v2, %v669_v3 }
  0xfb   :  { %v950_v13 = vmax.f32 %v948_v0, %v949_v5  ;;  %v955_v14 = vmax.f32 %v924_v10, %v925_v9  ;;  %v1390_v44 = vpop.f32.mrf.mxu0  ;;  %v1418_v15 = vpop.f32.mrf.mxu1  ;;  %v945_v50 = vmax.f32 %v943_v4, %v944_v19 }
  0xfc   :  { %v896_v17 = vadd.f32 %v849_v7, %v668_v11  ;;  %v671_v18 = vadd.f32 %v1390_v44, %v425_v8  ;;  %v927_v47 = vsel %vm1882_vm2, %v897_v43, -1e+30  ;;  %v938_v7 = vmax.f32 %v936_v28, %v937_v51 }
  0xfd   :  { %v951_v45 = vrot.slane %v950_v13, 2  ;;  %v956_v46 = vrot.slane %v955_v14, 4  ;;  %v631_v20 = vpop.f32.mrf.mxu0  ;;  %v859_v21 = vpop.f32.mrf.mxu1  ;;  %v946_v1 = vrot.slane %v945_v50, 1 }
  0xfe   :  { %v926_v25 = vsel %vm1886_vm3, %v896_v17, -1e+30  ;;  %v899_v26 = vadd.f32 %v1418_v15, %v671_v18  ;;  %v670_v27 = vadd.f32 %v631_v20, %v420_v16  ;;  %v939_v18 = vrot.slane %v938_v7, 1  ;;  %v1222_v20 = vld [vmem:[%s1948_s3] ss:$0 sm:$0xff] }
  0xff   :  { %v957_v29 = vmax.f32 %v955_v14, %v956_v46  ;;  %v1393_v48 = vpop.f32.mrf.mxu0  ;;  %v1421_v30 = vpop.f32.mrf.mxu1  ;;  %v962_v32 = vmax.f32 %v926_v25, %v927_v47  ;;  %v952_v35 = vmax.f32 %v950_v13, %v951_v45  ;;  %v947_v13 = vmax.f32 %v945_v50, %v946_v1 }
 0x100   :  { %v898_v33 = vadd.f32 %v859_v21, %v670_v27  ;;  %v673_v34 = vadd.f32 %v1393_v48, %v435_v22  ;;  %v929_v58 = vsel %vm1882_vm2, %v899_v26, -1e+30  ;;  %v940_v23 = vmax.f32 %v938_v7, %v939_v18 }
 0x101   :  { %v958_v36 = vrot.slane %v957_v29, 2  ;;  %v641_v37 = vpop.f32.mrf.mxu0  ;;  %v869_v38 = vpop.f32.mrf.mxu1  ;;  %v963_v57 = vrot.slane %v962_v32, 4  ;;  %v953_v2 = vrot.slane %v952_v35, 1  ;;  %v998_v25 = vadd.f32 %v1222_v20, %v947_v13 }
 0x102   :  { %v928_v59 = vsel %vm1886_vm3, %v898_v33, -1e+30  ;;  %v672_v60 = vadd.f32 %v641_v37, %v430_v31  ;;  %v901_v62 = vadd.f32 %v1421_v30, %v673_v34 }
 0x103   :  { %v959_v52 = vmax.f32 %v957_v29, %v958_v36  ;;  %v969_v61 = vmax.f32 %v928_v59, %v929_v58  ;;  %v1396_v63 = vpop.f32.mrf.mxu0  ;;  %v1424_v39 = vpop.f32.mrf.mxu1  ;;  %v964_v54 = vmax.f32 %v962_v32, %v963_v57  ;;  %v954_v14 = vmax.f32 %v952_v35, %v953_v2 }
 0x104   :  { %v900_v40 = vadd.f32 %v869_v38, %v672_v60  ;;  %v675_v0 = vadd.f32 %v1396_v63, %v445_v49  ;;  %v931_v10 = vsel %vm1882_vm2, %v901_v62, -1e+30  ;;  %v1006_v32 = vmax.f32 %v998_v25, 0.0 }
 0x105   :  { %v970_v41 = vrot.slane %v969_v61, 4  ;;  %v651_v42 = vpop.f32.mrf.mxu0  ;;  %v965_v3 = vrot.slane %v964_v54, 2  ;;  %v960_v8 = vrot.slane %v959_v52, 1  ;;  %v879_v55 = vpop.f32.mrf.mxu1  ;;  %v999_v28 = vadd.f32 %v1222_v20, %v954_v14 }
 0x106   :  { %v930_v4 = vsel %vm1886_vm3, %v900_v40, -1e+30  ;;  %v903_v5 = vadd.f32 %v1424_v39, %v675_v0  ;;  %v674_v6 = vadd.f32 %v651_v42, %v440_v53  ;;  %v997_v35 = vadd.f32 %v1222_v20, %v940_v23 }
 0x107   :  { %v971_v9 = vmax.f32 %v969_v61, %v970_v41  ;;  %v966_v56 = vmax.f32 %v964_v54, %v965_v3  ;;  %v976_v11 = vmax.f32 %v930_v4, %v931_v10  ;;  %v961_v19 = vmax.f32 %v959_v52, %v960_v8  ;;  %v1223_v8 = vld [vmem:[%s1950_s5] ss:$0 sm:$0xff] }
 0x108   :  { %v902_v12 = vadd.f32 %v879_v55, %v674_v6  ;;  %v933_v16 = vsel %vm1882_vm2, %v903_v5, -1e+30  ;;  %v1007_v49 = vmax.f32 %v999_v28, 0.0  ;;  %v1044_v58 = vrot.slane %v1006_v32, 7 }
 0x109   :  { %v972_v43 = vrot.slane %v971_v9, 2  ;;  %v967_v44 = vrot.slane %v966_v56, 1  ;;  %v977_v15 = vrot.slane %v976_v11, 4  ;;  %v1000_v47 = vadd.f32 %v1222_v20, %v961_v19 }
 0x10a   :  { %v932_v17 = vsel %vm1886_vm3, %v902_v12, -1e+30  ;;  %v1047_v51 = vrot.slane %v1007_v49, 6  ;;  %v1005_v61 = vmax.f32 %v997_v35, 0.0 }
 0x10b   :  { %v973_v45 = vmax.f32 %v971_v9, %v972_v43  ;;  %v983_v46 = vmax.f32 %v932_v17, %v933_v16  ;;  %v968_v21 = vmax.f32 %v966_v56, %v967_v44  ;;  %v978_v22 = vmax.f32 %v976_v11, %v977_v15 }
 0x10c   :  { %v1008_v36 = vmax.f32 %v1000_v47, 0.0  ;;  %v1046_v54 = vsel %vm1045_vm4, %v1044_v58, %v1005_v61 }
 0x10d   :  { %v974_v26 = vrot.slane %v973_v45, 1  ;;  %v984_v27 = vrot.slane %v983_v46, 4  ;;  %v979_v29 = vrot.slane %v978_v22, 2  ;;  %v1001_v30 = vadd.f32 %v1222_v20, %v968_v21 }
 0x10e   :  { %v1050_v62 = vrot.slane %v1008_v36, 5  ;;  %v1049_v1 = vsel %vm1048_vm5, %v1047_v51, %v1046_v54 }
 0x10f   :  { %v975_v48 = vmax.f32 %v973_v45, %v974_v26  ;;  %v985_v24 = vmax.f32 %v983_v46, %v984_v27  ;;  %v980_v31 = vmax.f32 %v978_v22, %v979_v29  ;;  %v1009_v38 = vmax.f32 %v1001_v30, 0.0 }
 0x110   :  { %v1052_v42 = vsel %vm1051_vm6, %v1050_v62, %v1049_v1 }
 0x111   :  { %v1002_v33 = vadd.f32 %v1222_v20, %v975_v48  ;;  %v986_v34 = vrot.slane %v985_v24, 2  ;;  %v981_v50 = vrot.slane %v980_v31, 1  ;;  %v1053_v39 = vrot.slane %v1009_v38, 4 }
 0x113   :  { %v987_v37 = vmax.f32 %v985_v24, %v986_v34  ;;  %v982_v57 = vmax.f32 %v980_v31, %v981_v50  ;;  %v1010_v59 = vmax.f32 %v1002_v33, 0.0  ;;  %v1055_v3 = vsel %vm1054_vm7, %v1053_v39, %v1052_v42 }
 0x115   :  { %v988_v60 = vrot.slane %v987_v37, 1  ;;  %v1003_v52 = vadd.f32 %v1222_v20, %v982_v57  ;;  %v1056_v40 = vrot.slane %v1010_v59, 3 }
 0x117   :  { %v989_v63 = vmax.f32 %v987_v37, %v988_v60  ;;  %v1011_v53 = vmax.f32 %v1003_v52, 0.0  ;;  %v1058_v4 = vsel %vm1057_vm8, %v1056_v40, %v1055_v3 }
 0x119   :  { %v1004_v0 = vadd.f32 %v1222_v20, %v989_v63  ;;  %v1059_v2 = vrot.slane %v1011_v53, 2 }
 0x11b   :  { %v1012_v41 = vmax.f32 %v1004_v0, 0.0  ;;  %v1061_v6 = vsel %vm1060_vm9, %v1059_v2, %v1058_v4 }
 0x11d   :  { %v1062_v5 = vrot.slane %v1012_v41, 1 }
 0x11f   :  { %v1064_v7 = vsel %vm1063_vm10, %v1062_v5, %v1061_v6 }
 0x120   :  { %1458 = vmatmul.mubr.f32.vlgmr.msra.gmra.mxu0 %v1064_v7 }
 0x1e0   :  { %v1132_v9 = vpop.f32.mrf.mxu0 }
 0x1e1   :  { %v1133_v10 = vadd.f32 %v1223_v8, %v1132_v9 }
 0x1e2   :  { %v1459_v55 = vpop.f32.mrf.mxu0 }
 0x1e3   :  { %1136 = vst [vmem:[#allocation2] sm:$0xff] %v1133_v10 }
 0x1e4   :  { %1474 = shalt.err (!%p1471_p4)
}
 0x1e5   :  { %1146 = dma.vmem_to_hbm [thread:$0]  %s1144_s25, 128, %s1951_s6, [#allocation3]  }
 0x1e6   :  { %1483 = dma.done.wait [#allocation3], 128  }
 0x1e7   :  { %1484 = vsyncadd [#allocation3], 4294967168 }
 0x1e8   :  { %1150 = vsyncpa [#allocation3], 1 }

</bundles_post_ra>
